<compile_context>
chip_gen: v6e
topology: v6e:2x2x1
jax: 0.10.0
libtpu: 0.0.40
codegen_flags: <defaults>
</compile_context>

<pallas_src>
import functools

import jax
import jax.numpy as jnp
from jax.experimental import pallas as pl
from jax.experimental.pallas import tpu as pltpu

LANE = 128
SUBLANE = 8
F32_BYTES = 4


def _round_up(x, m):
    return ((x + m - 1) // m) * m


def _conv3x3s2_kernel(ph_ref, w_ref, b_ref, o_ref, *, th, wo, cin):
    """One output tile: TH output rows x WO output cols of the 3x3/s2/p1 conv.

    ph_ref : (4, TH+1, WO+1, Cin)  padded-input phases, index p = 2*(row parity)+col parity
    w_ref  : (9, Cin, Cout_pad)    per-tap weights, tap index t = kh*3 + kw
    b_ref  : (1, Cout_pad)         bias (zero-padded to 128 lanes)
    o_ref  : (TH, WO, Cout_pad)    output tile (lane-dense)

    Conv tap (kh, kw) of output pixel (oh, ow) reads padded input at
    (2*oh + kh, 2*ow + kw) == phase[2*(kh%2)+(kw%2)][oh + kh//2, ow + kw//2].
    """
    m = th * wo

    def tap(phase, dr, dc):
        # Static window -> (TH, WO, Cin) -> (TH*WO, Cin). WO is a multiple of 8,
        # so merging (TH, WO) into the sublane dim is layout-trivial; Cin stays
        # on lanes so no cross-lane movement is needed per tap.
        return ph_ref[phase, dr:dr + th, dc:dc + wo, :].reshape(m, cin)

    taps = (
        tap(0, 0, 0), tap(1, 0, 0), tap(0, 0, 1),   # kh = 0 : kw = 0, 1, 2
        tap(2, 0, 0), tap(3, 0, 0), tap(2, 0, 1),   # kh = 1
        tap(0, 1, 0), tap(1, 1, 0), tap(0, 1, 1),   # kh = 2
    )

    # f32 accumulator initialized with the (broadcast) bias; 9 accumulating
    # MXU matmuls (one per tap), unrolled at trace time.
    acc = b_ref[...].astype(jnp.float32)
    for t in range(9):
        acc = acc + jnp.dot(taps[t], w_ref[t],
                            preferred_element_type=jnp.float32)
    o_ref[...] = acc.reshape(th, wo, -1).astype(o_ref.dtype)


def conv_block_forward(x, weight, bias):
    """ConvBlock.forward with default flags: a single 3x3 / stride-2 / pad-1 conv.

    x:      (N, Cin, H, W)    float32, NCHW
    weight: (Cout, Cin, 3, 3) float32 (PyTorch OIHW)
    bias:   (Cout,)           float32
    returns (N, Cout, Ho, Wo) float32, NCHW
    """
    N, Cin, H, W = x.shape
    Cout = weight.shape[0]
    Ho = (H + 2 - 3) // 2 + 1
    Wo = (W + 2 - 3) // 2 + 1

    c_pad = _round_up(Cout, LANE)        # lane-dense output stores (no vst.msk)
    wo_pad = _round_up(Wo, SUBLANE)      # keeps in-kernel reshapes tile-aligned

    # ---- pick the output-row tile TH from an explicit VMEM budget ----------
    # Model Mosaic's (8, 128) minor-dim padding of every VMEM buffer plus
    # double-buffering of the pipelined input/output blocks.
    def vmem_bytes(th):
        phase_blk = (4 * (th + 1) * _round_up(wo_pad + 1, SUBLANE)
                     * _round_up(Cin, LANE) * F32_BYTES)
        out_blk = th * _round_up(wo_pad, SUBLANE) * c_pad * F32_BYTES
        w_blk = 9 * _round_up(Cin, SUBLANE) * c_pad * F32_BYTES
        b_blk = SUBLANE * c_pad * F32_BYTES
        acc_blk = th * wo_pad * c_pad * F32_BYTES           # live f32 accumulator
        return 2 * phase_blk + 2 * out_blk + w_blk + b_blk + acc_blk

    vmem_budget = 20 * 1024 * 1024       # leave headroom under the 32 MiB limit
    th = max(1, min(Ho, max(1, 2048 // wo_pad)))   # target ~2048 matmul rows/step
    while th > 1 and vmem_bytes(th) > vmem_budget:
        th -= 1

    n_h = pl.cdiv(Ho, th)
    ho_pad = n_h * th
    n_tiles = N * n_h

    # ---- layout glue: single ~1x pass over the input (no im2col blow-up) ---
    x_nhwc = jnp.transpose(x, (0, 2, 3, 1))                    # (N, H, W, Cin)
    hp2 = 2 * (ho_pad + 1)
    wp2 = 2 * (wo_pad + 1)
    x_padded = jnp.pad(
        x_nhwc, ((0, 0), (1, hp2 - H - 1), (1, wp2 - W - 1), (0, 0)))

    def phase(r, c):
        # Parity view + per-tile halo of one extra row.
        p = x_padded[:, r::2, c::2, :]            # (N, ho_pad+1, wo_pad+1, Cin)
        tiles = jnp.stack(
            [p[:, i * th:i * th + th + 1] for i in range(n_h)], axis=1)
        return tiles.reshape(n_tiles, th + 1, wo_pad + 1, Cin)

    # Stack the 4 phases so each grid step needs exactly one input DMA.
    phases = jnp.stack(
        [phase(0, 0), phase(0, 1), phase(1, 0), phase(1, 1)], axis=1)
    # phases: (n_tiles, 4, th+1, wo_pad+1, Cin) — block is the full trailing
    # extent per tile, i.e. one fully contiguous HBM region per DMA.

    # Weights: OIHW -> (kh, kw, cin, cout) -> (9, Cin, Cout_pad); bias -> (1, Cout_pad).
    w9 = jnp.transpose(weight, (2, 3, 1, 0)).reshape(9, Cin, Cout)
    w9 = jnp.pad(w9, ((0, 0), (0, 0), (0, c_pad - Cout))).astype(x.dtype)
    b2 = jnp.pad(bias.reshape(1, Cout).astype(jnp.float32),
                 ((0, 0), (0, c_pad - Cout)))
    # TODO(synk): on v6e/v7x, cast the phase tiles and w9 to bfloat16 (keeping
    # preferred_element_type=f32 accumulation) once callers tolerate bf16
    # operand rounding; kept in f32 here to preserve the exact reference check.

    phase_spec = pl.BlockSpec((None, 4, th + 1, wo_pad + 1, Cin),
                              lambda i: (i, 0, 0, 0, 0))
    w_spec = pl.BlockSpec((9, Cin, c_pad), lambda i: (0, 0, 0))     # VMEM-resident
    b_spec = pl.BlockSpec((1, c_pad), lambda i: (0, 0))             # VMEM-resident
    out_spec = pl.BlockSpec((None, th, wo_pad, c_pad), lambda i: (i, 0, 0, 0))

    itemsize = jnp.dtype(x.dtype).itemsize
    cost = pl.CostEstimate(
        flops=2 * n_tiles * th * wo_pad * 9 * Cin * c_pad,
        transcendentals=0,
        bytes_accessed=itemsize * (4 * n_tiles * (th + 1) * (wo_pad + 1) * Cin
                                   + 9 * Cin * c_pad + c_pad
                                   + n_tiles * th * wo_pad * c_pad),
    )

    kernel = functools.partial(_conv3x3s2_kernel, th=th, wo=wo_pad, cin=Cin)
    out = pl.pallas_call(
        kernel,
        out_shape=jax.ShapeDtypeStruct((n_tiles, th, wo_pad, c_pad), x.dtype),
        grid_spec=pltpu.PrefetchScalarGridSpec(
            num_scalar_prefetch=0,
            grid=(n_tiles,),
            in_specs=[phase_spec, w_spec, b_spec],
            out_specs=out_spec,
        ),
        compiler_params=pltpu.CompilerParams(
            dimension_semantics=("parallel",),     # megacore-shardable M axis
            vmem_limit_bytes=32 * 1024 * 1024,     # tile picker keeps us <20 MiB
        ),
        cost_estimate=cost,
    )(phases, w9, b2)

    # (n_tiles, TH, Wo_pad, Cout_pad) -> (N, Ho, Wo, Cout) -> NCHW (module contract).
    out = out.reshape(N, ho_pad, wo_pad, c_pad)[:, :Ho, :Wo, :Cout]
    return jnp.transpose(out, (0, 3, 1, 2))


if __name__ == "__main__":
    key = jax.random.PRNGKey(0)
    k_x, k_w, k_b = jax.random.split(key, 3)

    # ConvBlock(channels=(4, 8)) at small shapes: x is (N=2, Cin=4, H=16, W=16)
    N, Cin, Cout, H, W = 2, 4, 8, 16, 16
    x = jax.random.normal(k_x, (N, Cin, H, W), dtype=jnp.float32)
    weight = jax.random.normal(k_w, (Cout, Cin, 3, 3), dtype=jnp.float32) * 0.1
    bias = jax.random.normal(k_b, (Cout,), dtype=jnp.float32) * 0.1

    fwd = jax.jit(conv_block_forward)
    y = jax.block_until_ready(fwd(x, weight, bias))
    assert y.shape == (N, Cout, H // 2, W // 2), y.shape

    # Cross-check against XLA's conv (same semantics as nn.Conv2d(k=3, s=2, p=1)).
    y_ref = jax.lax.conv_general_dilated(
        x, weight, window_strides=(2, 2), padding=((1, 1), (1, 1)),
        dimension_numbers=("NCHW", "OIHW", "NCHW"),
    ) + bias.reshape(1, Cout, 1, 1)
    assert jnp.allclose(y, y_ref, atol=1e-4, rtol=1e-4), \
        float(jnp.max(jnp.abs(y - y_ref)))

    # TODO(synk): bn / avg_pool / relu branches are dead under default flags
    # (bn=False, pooling=False, activation=False) and are not implemented.
    print("KERNEL_OK")
</pallas_src>

<mosaic_0001>
module attributes {stable_mosaic.version = 11 : i64} {
  func.func @_conv3x3s2_kernel(%arg0: i32, %arg1: memref<1x4x9x9x4xf32, #tpu.memory_space<vmem>>, %arg2: memref<9x4x128xf32, #tpu.memory_space<vmem>>, %arg3: memref<1x128xf32, #tpu.memory_space<vmem>>, %arg4: memref<1x8x8x128xf32, #tpu.memory_space<vmem>>) attributes {dimension_semantics = [#tpu.dimension_semantics<parallel>], iteration_bounds = array<i64: 2>, scalar_prefetch = 0 : i64, scratch_operands = 0 : i64, tpu.core_type = #tpu.core_type<tc>, window_params = [{transform_indices = @transform_0, window_bounds = array<i64: 1, 4, 9, 9, 4>}, {pipeline_mode = #tpu.pipeline_mode<synchronous>, transform_indices = @transform_1, window_bounds = array<i64: 9, 4, 128>}, {pipeline_mode = #tpu.pipeline_mode<synchronous>, transform_indices = @transform_2, window_bounds = array<i64: 1, 128>}, {transform_indices = @transform_3, window_bounds = array<i64: 1, 8, 8, 128>}]} {
    %c0 = arith.constant 0 : index
    %c0_0 = arith.constant 0 : index
    %c0_1 = arith.constant 0 : index
    %c0_2 = arith.constant 0 : index
    %c0_3 = arith.constant 0 : index
    %0 = vector.load %arg1[%c0, %c0_0, %c0_1, %c0_2, %c0_3] : memref<1x4x9x9x4xf32, #tpu.memory_space<vmem>>, vector<1x1x8x8x4xf32>
    %1 = vector.shape_cast %0 : vector<1x1x8x8x4xf32> to vector<8x8x4xf32>
    %2 = vector.shape_cast %1 : vector<8x8x4xf32> to vector<64x4xf32>
    %c0_4 = arith.constant 0 : index
    %c1 = arith.constant 1 : index
    %c0_5 = arith.constant 0 : index
    %c0_6 = arith.constant 0 : index
    %c0_7 = arith.constant 0 : index
    %3 = vector.load %arg1[%c0_4, %c1, %c0_5, %c0_6, %c0_7] : memref<1x4x9x9x4xf32, #tpu.memory_space<vmem>>, vector<1x1x8x8x4xf32>
    %4 = vector.shape_cast %3 : vector<1x1x8x8x4xf32> to vector<8x8x4xf32>
    %5 = vector.shape_cast %4 : vector<8x8x4xf32> to vector<64x4xf32>
    %c0_8 = arith.constant 0 : index
    %c0_9 = arith.constant 0 : index
    %c0_10 = arith.constant 0 : index
    %c1_11 = arith.constant 1 : index
    %c0_12 = arith.constant 0 : index
    %6 = vector.load %arg1[%c0_8, %c0_9, %c0_10, %c1_11, %c0_12] : memref<1x4x9x9x4xf32, #tpu.memory_space<vmem>>, vector<1x1x8x8x4xf32>
    %7 = vector.shape_cast %6 : vector<1x1x8x8x4xf32> to vector<8x8x4xf32>
    %8 = vector.shape_cast %7 : vector<8x8x4xf32> to vector<64x4xf32>
    %c0_13 = arith.constant 0 : index
    %c2 = arith.constant 2 : index
    %c0_14 = arith.constant 0 : index
    %c0_15 = arith.constant 0 : index
    %c0_16 = arith.constant 0 : index
    %9 = vector.load %arg1[%c0_13, %c2, %c0_14, %c0_15, %c0_16] : memref<1x4x9x9x4xf32, #tpu.memory_space<vmem>>, vector<1x1x8x8x4xf32>
    %10 = vector.shape_cast %9 : vector<1x1x8x8x4xf32> to vector<8x8x4xf32>
    %11 = vector.shape_cast %10 : vector<8x8x4xf32> to vector<64x4xf32>
    %c0_17 = arith.constant 0 : index
    %c3 = arith.constant 3 : index
    %c0_18 = arith.constant 0 : index
    %c0_19 = arith.constant 0 : index
    %c0_20 = arith.constant 0 : index
    %12 = vector.load %arg1[%c0_17, %c3, %c0_18, %c0_19, %c0_20] : memref<1x4x9x9x4xf32, #tpu.memory_space<vmem>>, vector<1x1x8x8x4xf32>
    %13 = vector.shape_cast %12 : vector<1x1x8x8x4xf32> to vector<8x8x4xf32>
    %14 = vector.shape_cast %13 : vector<8x8x4xf32> to vector<64x4xf32>
    %c0_21 = arith.constant 0 : index
    %c2_22 = arith.constant 2 : index
    %c0_23 = arith.constant 0 : index
    %c1_24 = arith.constant 1 : index
    %c0_25 = arith.constant 0 : index
    %15 = vector.load %arg1[%c0_21, %c2_22, %c0_23, %c1_24, %c0_25] : memref<1x4x9x9x4xf32, #tpu.memory_space<vmem>>, vector<1x1x8x8x4xf32>
    %16 = vector.shape_cast %15 : vector<1x1x8x8x4xf32> to vector<8x8x4xf32>
    %17 = vector.shape_cast %16 : vector<8x8x4xf32> to vector<64x4xf32>
    %c0_26 = arith.constant 0 : index
    %c0_27 = arith.constant 0 : index
    %c1_28 = arith.constant 1 : index
    %c0_29 = arith.constant 0 : index
    %c0_30 = arith.constant 0 : index
    %18 = vector.load %arg1[%c0_26, %c0_27, %c1_28, %c0_29, %c0_30] : memref<1x4x9x9x4xf32, #tpu.memory_space<vmem>>, vector<1x1x8x8x4xf32>
    %19 = vector.shape_cast %18 : vector<1x1x8x8x4xf32> to vector<8x8x4xf32>
    %20 = vector.shape_cast %19 : vector<8x8x4xf32> to vector<64x4xf32>
    %c0_31 = arith.constant 0 : index
    %c1_32 = arith.constant 1 : index
    %c1_33 = arith.constant 1 : index
    %c0_34 = arith.constant 0 : index
    %c0_35 = arith.constant 0 : index
    %21 = vector.load %arg1[%c0_31, %c1_32, %c1_33, %c0_34, %c0_35] : memref<1x4x9x9x4xf32, #tpu.memory_space<vmem>>, vector<1x1x8x8x4xf32>
    %22 = vector.shape_cast %21 : vector<1x1x8x8x4xf32> to vector<8x8x4xf32>
    %23 = vector.shape_cast %22 : vector<8x8x4xf32> to vector<64x4xf32>
    %c0_36 = arith.constant 0 : index
    %c0_37 = arith.constant 0 : index
    %c1_38 = arith.constant 1 : index
    %c1_39 = arith.constant 1 : index
    %c0_40 = arith.constant 0 : index
    %24 = vector.load %arg1[%c0_36, %c0_37, %c1_38, %c1_39, %c0_40] : memref<1x4x9x9x4xf32, #tpu.memory_space<vmem>>, vector<1x1x8x8x4xf32>
    %25 = vector.shape_cast %24 : vector<1x1x8x8x4xf32> to vector<8x8x4xf32>
    %26 = vector.shape_cast %25 : vector<8x8x4xf32> to vector<64x4xf32>
    %c0_41 = arith.constant 0 : index
    %c0_42 = arith.constant 0 : index
    %27 = vector.load %arg3[%c0_41, %c0_42] : memref<1x128xf32, #tpu.memory_space<vmem>>, vector<1x128xf32>
    %c0_43 = arith.constant 0 : index
    %c0_44 = arith.constant 0 : index
    %c0_45 = arith.constant 0 : index
    %28 = vector.load %arg2[%c0_43, %c0_44, %c0_45] : memref<9x4x128xf32, #tpu.memory_space<vmem>>, vector<1x4x128xf32>
    %29 = vector.shape_cast %28 : vector<1x4x128xf32> to vector<4x128xf32>
    %cst = arith.constant dense<0.000000e+00> : vector<64x128xf32>
    %30 = tpu.matmul %2, %29, %cst {dimension_numbers = #tpu.dot_dimension_numbers<[1], [0], [0], [1], [0, 0, 1, 1], [], []>} : vector<64x4xf32>, vector<4x128xf32>, vector<64x128xf32> -> vector<64x128xf32>
    %31 = vector.broadcast %27 : vector<1x128xf32> to vector<64x128xf32>
    %32 = arith.addf %31, %30 : vector<64x128xf32>
    %c1_46 = arith.constant 1 : index
    %c0_47 = arith.constant 0 : index
    %c0_48 = arith.constant 0 : index
    %33 = vector.load %arg2[%c1_46, %c0_47, %c0_48] : memref<9x4x128xf32, #tpu.memory_space<vmem>>, vector<1x4x128xf32>
    %34 = vector.shape_cast %33 : vector<1x4x128xf32> to vector<4x128xf32>
    %cst_49 = arith.constant dense<0.000000e+00> : vector<64x128xf32>
    %35 = tpu.matmul %5, %34, %cst_49 {dimension_numbers = #tpu.dot_dimension_numbers<[1], [0], [0], [1], [0, 0, 1, 1], [], []>} : vector<64x4xf32>, vector<4x128xf32>, vector<64x128xf32> -> vector<64x128xf32>
    %36 = arith.addf %32, %35 : vector<64x128xf32>
    %c2_50 = arith.constant 2 : index
    %c0_51 = arith.constant 0 : index
    %c0_52 = arith.constant 0 : index
    %37 = vector.load %arg2[%c2_50, %c0_51, %c0_52] : memref<9x4x128xf32, #tpu.memory_space<vmem>>, vector<1x4x128xf32>
    %38 = vector.shape_cast %37 : vector<1x4x128xf32> to vector<4x128xf32>
    %cst_53 = arith.constant dense<0.000000e+00> : vector<64x128xf32>
    %39 = tpu.matmul %8, %38, %cst_53 {dimension_numbers = #tpu.dot_dimension_numbers<[1], [0], [0], [1], [0, 0, 1, 1], [], []>} : vector<64x4xf32>, vector<4x128xf32>, vector<64x128xf32> -> vector<64x128xf32>
    %40 = arith.addf %36, %39 : vector<64x128xf32>
    %c3_54 = arith.constant 3 : index
    %c0_55 = arith.constant 0 : index
    %c0_56 = arith.constant 0 : index
    %41 = vector.load %arg2[%c3_54, %c0_55, %c0_56] : memref<9x4x128xf32, #tpu.memory_space<vmem>>, vector<1x4x128xf32>
    %42 = vector.shape_cast %41 : vector<1x4x128xf32> to vector<4x128xf32>
    %cst_57 = arith.constant dense<0.000000e+00> : vector<64x128xf32>
    %43 = tpu.matmul %11, %42, %cst_57 {dimension_numbers = #tpu.dot_dimension_numbers<[1], [0], [0], [1], [0, 0, 1, 1], [], []>} : vector<64x4xf32>, vector<4x128xf32>, vector<64x128xf32> -> vector<64x128xf32>
    %44 = arith.addf %40, %43 : vector<64x128xf32>
    %c4 = arith.constant 4 : index
    %c0_58 = arith.constant 0 : index
    %c0_59 = arith.constant 0 : index
    %45 = vector.load %arg2[%c4, %c0_58, %c0_59] : memref<9x4x128xf32, #tpu.memory_space<vmem>>, vector<1x4x128xf32>
    %46 = vector.shape_cast %45 : vector<1x4x128xf32> to vector<4x128xf32>
    %cst_60 = arith.constant dense<0.000000e+00> : vector<64x128xf32>
    %47 = tpu.matmul %14, %46, %cst_60 {dimension_numbers = #tpu.dot_dimension_numbers<[1], [0], [0], [1], [0, 0, 1, 1], [], []>} : vector<64x4xf32>, vector<4x128xf32>, vector<64x128xf32> -> vector<64x128xf32>
    %48 = arith.addf %44, %47 : vector<64x128xf32>
    %c5 = arith.constant 5 : index
    %c0_61 = arith.constant 0 : index
    %c0_62 = arith.constant 0 : index
    %49 = vector.load %arg2[%c5, %c0_61, %c0_62] : memref<9x4x128xf32, #tpu.memory_space<vmem>>, vector<1x4x128xf32>
    %50 = vector.shape_cast %49 : vector<1x4x128xf32> to vector<4x128xf32>
    %cst_63 = arith.constant dense<0.000000e+00> : vector<64x128xf32>
    %51 = tpu.matmul %17, %50, %cst_63 {dimension_numbers = #tpu.dot_dimension_numbers<[1], [0], [0], [1], [0, 0, 1, 1], [], []>} : vector<64x4xf32>, vector<4x128xf32>, vector<64x128xf32> -> vector<64x128xf32>
    %52 = arith.addf %48, %51 : vector<64x128xf32>
    %c6 = arith.constant 6 : index
    %c0_64 = arith.constant 0 : index
    %c0_65 = arith.constant 0 : index
    %53 = vector.load %arg2[%c6, %c0_64, %c0_65] : memref<9x4x128xf32, #tpu.memory_space<vmem>>, vector<1x4x128xf32>
    %54 = vector.shape_cast %53 : vector<1x4x128xf32> to vector<4x128xf32>
    %cst_66 = arith.constant dense<0.000000e+00> : vector<64x128xf32>
    %55 = tpu.matmul %20, %54, %cst_66 {dimension_numbers = #tpu.dot_dimension_numbers<[1], [0], [0], [1], [0, 0, 1, 1], [], []>} : vector<64x4xf32>, vector<4x128xf32>, vector<64x128xf32> -> vector<64x128xf32>
    %56 = arith.addf %52, %55 : vector<64x128xf32>
    %c7 = arith.constant 7 : index
    %c0_67 = arith.constant 0 : index
    %c0_68 = arith.constant 0 : index
    %57 = vector.load %arg2[%c7, %c0_67, %c0_68] : memref<9x4x128xf32, #tpu.memory_space<vmem>>, vector<1x4x128xf32>
    %58 = vector.shape_cast %57 : vector<1x4x128xf32> to vector<4x128xf32>
    %cst_69 = arith.constant dense<0.000000e+00> : vector<64x128xf32>
    %59 = tpu.matmul %23, %58, %cst_69 {dimension_numbers = #tpu.dot_dimension_numbers<[1], [0], [0], [1], [0, 0, 1, 1], [], []>} : vector<64x4xf32>, vector<4x128xf32>, vector<64x128xf32> -> vector<64x128xf32>
    %60 = arith.addf %56, %59 : vector<64x128xf32>
    %c8 = arith.constant 8 : index
    %c0_70 = arith.constant 0 : index
    %c0_71 = arith.constant 0 : index
    %61 = vector.load %arg2[%c8, %c0_70, %c0_71] : memref<9x4x128xf32, #tpu.memory_space<vmem>>, vector<1x4x128xf32>
    %62 = vector.shape_cast %61 : vector<1x4x128xf32> to vector<4x128xf32>
    %cst_72 = arith.constant dense<0.000000e+00> : vector<64x128xf32>
    %63 = tpu.matmul %26, %62, %cst_72 {dimension_numbers = #tpu.dot_dimension_numbers<[1], [0], [0], [1], [0, 0, 1, 1], [], []>} : vector<64x4xf32>, vector<4x128xf32>, vector<64x128xf32> -> vector<64x128xf32>
    %64 = arith.addf %60, %63 : vector<64x128xf32>
    %65 = vector.shape_cast %64 : vector<64x128xf32> to vector<8x8x128xf32>
    %c0_73 = arith.constant 0 : index
    %c0_74 = arith.constant 0 : index
    %c0_75 = arith.constant 0 : index
    %c0_76 = arith.constant 0 : index
    %66 = vector.load %arg4[%c0_73, %c0_74, %c0_75, %c0_76] : memref<1x8x8x128xf32, #tpu.memory_space<vmem>>, vector<1x8x8x128xf32>
    %67 = vector.shape_cast %66 : vector<1x8x8x128xf32> to vector<8x8x128xf32>
    %68 = vector.shape_cast %65 : vector<8x8x128xf32> to vector<1x8x8x128xf32>
    tpu.vector_store %arg4[%c0_73, %c0_74, %c0_75, %c0_76], %68 {strides = array<i32>} : memref<1x8x8x128xf32, #tpu.memory_space<vmem>>, vector<1x8x8x128xf32>,
    return
  }
  func.func @transform_0(%arg0: i32) -> (i32, i32, i32, i32, i32) {
    %c0_i32 = arith.constant 0 : i32
    %c0_i32_0 = arith.constant 0 : i32
    %c0_i32_1 = arith.constant 0 : i32
    %c0_i32_2 = arith.constant 0 : i32
    %c0_i32_3 = arith.constant 0 : i32
    return %arg0, %c0_i32, %c0_i32_0, %c0_i32_1, %c0_i32_2 : i32, i32, i32, i32, i32
  }
  func.func @transform_1(%arg0: i32) -> (i32, i32, i32) {
    %c0_i32 = arith.constant 0 : i32
    %c0_i32_0 = arith.constant 0 : i32
    %c0_i32_1 = arith.constant 0 : i32
    %c0_i32_2 = arith.constant 0 : i32
    return %c0_i32, %c0_i32_0, %c0_i32_1 : i32, i32, i32
  }
  func.func @transform_2(%arg0: i32) -> (i32, i32) {
    %c0_i32 = arith.constant 0 : i32
    %c0_i32_0 = arith.constant 0 : i32
    %c0_i32_1 = arith.constant 0 : i32
    return %c0_i32, %c0_i32_0 : i32, i32
  }
  func.func @transform_3(%arg0: i32) -> (i32, i32, i32, i32) {
    %c0_i32 = arith.constant 0 : i32
    %c0_i32_0 = arith.constant 0 : i32
    %c0_i32_1 = arith.constant 0 : i32
    %c0_i32_2 = arith.constant 0 : i32
    return %arg0, %c0_i32, %c0_i32_0, %c0_i32_1 : i32, i32, i32, i32
  }
}

</mosaic_0001>

<bundles_post_ra>
// kernel: conv_block_forward.1
= control target key start
LH: loop header
LB: loop body
LE: loop exit
PB: predicated region body
PF: predicated region fallthrough
CT: control target
= control target key end

     0   :  { %s2000_s12 = smov 0   ;;  %s2314_s0 = inlined_call_operand.vmem [shape: f32[2,4,9,9,4], index: 0, kind: input, shape index: {}]   ;;  %s2315_s1 = inlined_call_operand.vmem [shape: f32[9,4,128], index: 1, kind: input, shape index: {}]   ;;  %s2316_s2 = inlined_call_operand.vmem [shape: f32[1,128], index: 2, kind: input, shape index: {}]   ;;  %s2317_s3 = inlined_call_operand.vmem [shape: f32[2,8,8,128], index: 3, kind: output, shape index: {}]  }
   0x1 LB: > { %s1597_s13 = sadd.s32 4294967295, %s1978_s12   ;;  %p1601_p0 = scmp.ge.s32.totalorder %s1978_s12, 1  ;;  %s1978_s12 = sphi %s2000_s12, %s13_s12  }
   0x2   : > { %p137_p1 = scmp.lt.s32.totalorder %s1978_s12, 3 }
   0x4   : > { %p138_p2 = pnand %p1601_p0, %p137_p1 }
   0x5   : > { %p161_p3 = scmp.lt.s32.totalorder (!%p138_p2), %s1597_s13, 1 }
   0x6   : > { %141 = sbr.rel (%p138_p2) target bundleno = 286 (0x11e), region = 32 }
   0xb   : > { %v249_v0 = vld [vmem:[%s2315_s1] sm:$0xf]  ;;  %vm275_vm0 = vcmask 1043456   ;;  %v1671_v1 = vld [vmem:[%s2315_s1 + $0x4] sm:$0xf]  ;;  %s2319_s13 = smov (!%p161_p3, %s1597_s13), 1 }
   0xc   : > { %1961 = vmatprep.subr.msk.mxu1 %vm275_vm0, %v249_v0  ;;  %1835 = vmatprep.subr.msk.mxu0 %vm275_vm0, %v249_v0  ;;  %v1681_v2 = vld [vmem:[%s2315_s1 + $0x8] sm:$0xf]  ;;  %s1963_s20 = smul.u32 576, %s2319_s13  ;;  %vm250_vm1 = vcmask 31744   ;;  %v1691_v9 = vld [vmem:[%s2315_s1 + $0xc] sm:$0xf] }
   0xd   : > { %1962 = vmatpush3.msk.msra.mxu1 %vm275_vm0, %v249_v0  ;;  %1836 = vmatpush3.msk.msra.mxu0 %vm275_vm0, %v249_v0  ;;  %v1701_v10 = vld [vmem:[%s2315_s1 + $0x10] sm:$0xf]  ;;  %v1711_v19 = vld [vmem:[%s2315_s1 + $0x14] sm:$0xf]  ;;  %v1721_v20 = vld [vmem:[%s2315_s1 + $0x18] sm:$0xf] }
   0xe   : > { %1849 = vmatprep.subr.msk.mxu1 %vm275_vm0, %v1671_v1  ;;  %1863 = vmatprep.subr.msk.mxu0 %vm275_vm0, %v1681_v2  ;;  %s2029_s23 = scalar_lea.vmem %s2314_s0, %s1963_s20  ;;  %v1731_v37 = vld [vmem:[%s2315_s1 + $0x1c] sm:$0xf]  ;;  %v1741_v38 = vld [vmem:[%s2315_s1 + $0x20] sm:$0xf]  ;;  %s1753_s11 = sshll.u32 %s2319_s13, 6 }
   0xf   : > { %v171_v3 = vld [vmem:[%s2029_s23] sm:$0xff]  ;;  %v2036_v5 = vld [vmem:[%s2029_s23 + $0x10] sm:$0xff]  ;;  %s2299_s16 = scalar_lea.vmem %s2317_s3, %s1753_s11 }
  0x10   : > { %v2033_v4 = vld [vmem:[%s2029_s23 + $0x40] sm:$0xff]  ;;  %1837 = vmatprep.mubr.msk.f32.mxu0 %vm250_vm1, %v171_v3  ;;  %v2042_v6 = vld [vmem:[%s2029_s23 + $0x50] sm:$0xff] }
  0x11   : > { %1843 = vmatprep.mubr.msk.f32.mxu1 %vm250_vm1, %v2033_v4  ;;  %v2045_v7 = vld [vmem:[%s2029_s23 + $0x20] sm:$0xff]  ;;  %1838 = vmatmul.mubr.msk.f32.vlgmr.msra.gmra.mxu0 %vm250_vm1, %v2036_v5  ;;  %v2063_v11 = vld [vmem:[%s2029_s23 + $0x30] sm:$0xff] }
  0x12   : > { %v2048_v8 = vld [vmem:[%s2029_s23 + $0x60] sm:$0xff]  ;;  %1844 = vmatmul.mubr.msk.f32.vlgmr.msra.gmra.mxu1 %vm250_vm1, %v2042_v6  ;;  %1864 = vmatpush3.msk.msra.mxu0 %vm275_vm0, %v1681_v2  ;;  %v2066_v12 = vld [vmem:[%s2029_s23 + $0x70] sm:$0xff] }
  0x13   : > { %1850 = vmatpush3.msk.msra.mxu1 %vm275_vm0, %v1671_v1  ;;  %1840 = vmatprep.mubr.msk.f32.mxu0 %vm250_vm1, %v2045_v7  ;;  %v1605_v13 = vld [vmem:[%s2029_s23 + $0x90] sm:$0xff]  ;;  %v188_v14 = vld [vmem:[%s2029_s23 + $0x1] sm:$0xff] }
  0x14   : > { %1846 = vmatprep.mubr.msk.f32.mxu1 %vm250_vm1, %v2048_v8  ;;  %1877 = vmatprep.subr.msk.mxu1 %vm275_vm0, %v1691_v9  ;;  %v2083_v15 = vld [vmem:[%s2029_s23 + $0xa0] sm:$0xff]  ;;  %v2086_v16 = vld [vmem:[%s2029_s23 + $0x11] sm:$0xff] }
  0x15   : > { %1891 = vmatprep.subr.msk.mxu0 %vm275_vm0, %v1701_v10  ;;  %1841 = vmatmul.mubr.msk.f32.gmra.mxu0 %vm250_vm1, %v2063_v11  ;;  %v2089_v17 = vld [vmem:[%s2029_s23 + $0xb0] sm:$0xff]  ;;  %v2092_v18 = vld [vmem:[%s2029_s23 + $0x21] sm:$0xff] }
  0x16   : > { %1847 = vmatmul.mubr.msk.f32.gmra.mxu1 %vm250_vm1, %v2066_v12  ;;  %1865 = vmatprep.mubr.msk.f32.mxu0 %vm250_vm1, %v188_v14  ;;  %v2107_v21 = vld [vmem:[%s2029_s23 + $0xc0] sm:$0xff]  ;;  %v2110_v22 = vld [vmem:[%s2029_s23 + $0x31] sm:$0xff] }
  0x17   : > { %1851 = vmatprep.mubr.msk.f32.mxu1 %vm250_vm1, %v1605_v13  ;;  %v2117_v23 = vld [vmem:[%s2029_s23 + $0xd0] sm:$0xff]  ;;  %v2120_v24 = vld [vmem:[%s2029_s23 + $0x41] sm:$0xff] }
  0x18   : > { %v2133_v25 = vld [vmem:[%s2029_s23 + $0xe0] sm:$0xff]  ;;  %v2136_v26 = vld [vmem:[%s2029_s23 + $0x51] sm:$0xff] }
  0x19   : > { %1866 = vmatmul.mubr.msk.f32.vlgmr.msra.gmra.mxu0 %vm250_vm1, %v2086_v16  ;;  %v2139_v27 = vld [vmem:[%s2029_s23 + $0xf0] sm:$0xff]  ;;  %v2142_v28 = vld [vmem:[%s2029_s23 + $0x61] sm:$0xff] }
  0x1a   : > { %1852 = vmatmul.mubr.msk.f32.vlgmr.msra.gmra.mxu1 %vm250_vm1, %v2083_v15  ;;  %1892 = vmatpush3.msk.msra.mxu0 %vm275_vm0, %v1701_v10  ;;  %v2153_v29 = vld [vmem:[%s2029_s23 + $0x100] sm:$0xff]  ;;  %v2156_v30 = vld [vmem:[%s2029_s23 + $0x71] sm:$0xff] }
  0x1b   : > { %1878 = vmatpush3.msk.msra.mxu1 %vm275_vm0, %v1691_v9  ;;  %1854 = vmatprep.mubr.msk.f32.mxu1 %vm250_vm1, %v2089_v17  ;;  %v1613_v31 = vld [vmem:[%s2029_s23 + $0x120] sm:$0xff]  ;;  %v1621_v32 = vld [vmem:[%s2029_s23 + $0x1b0] sm:$0xff] }
  0x1c   : > { %1868 = vmatprep.mubr.msk.f32.mxu0 %vm250_vm1, %v2092_v18  ;;  %1905 = vmatprep.subr.msk.mxu1 %vm275_vm0, %v1711_v19  ;;  %v1614_v33 = vld [vmem:[%s2029_s23 + $0x130] sm:$0xff]  ;;  %v1622_v34 = vld [vmem:[%s2029_s23 + $0x1c0] sm:$0xff] }
  0x1d   : > { %1919 = vmatprep.subr.msk.mxu0 %vm275_vm0, %v1721_v20  ;;  %1869 = vmatmul.mubr.msk.f32.gmra.mxu0 %vm250_vm1, %v2110_v22  ;;  %v1615_v35 = vld [vmem:[%s2029_s23 + $0x140] sm:$0xff]  ;;  %v1623_v36 = vld [vmem:[%s2029_s23 + $0x1d0] sm:$0xff] }
  0x1e   : > { %1855 = vmatmul.mubr.msk.f32.gmra.mxu1 %vm250_vm1, %v2107_v21  ;;  %1871 = vmatprep.mubr.msk.f32.mxu0 %vm250_vm1, %v2120_v24  ;;  %v1616_v39 = vld [vmem:[%s2029_s23 + $0x150] sm:$0xff]  ;;  %v1624_v40 = vld [vmem:[%s2029_s23 + $0x1e0] sm:$0xff] }
  0x1f   : > { %1857 = vmatprep.mubr.msk.f32.mxu1 %vm250_vm1, %v2117_v23  ;;  %v1617_v41 = vld [vmem:[%s2029_s23 + $0x160] sm:$0xff]  ;;  %v1625_v42 = vld [vmem:[%s2029_s23 + $0x1f0] sm:$0xff] }
  0x20   : > { %v1618_v43 = vld [vmem:[%s2029_s23 + $0x170] sm:$0xff]  ;;  %v1626_v44 = vld [vmem:[%s2029_s23 + $0x200] sm:$0xff] }
  0x21   : > { %1872 = vmatmul.mubr.msk.f32.gmra.mxu0 %vm250_vm1, %v2136_v26  ;;  %v1619_v45 = vld [vmem:[%s2029_s23 + $0x180] sm:$0xff]  ;;  %v1627_v46 = vld [vmem:[%s2029_s23 + $0x210] sm:$0xff] }
  0x22   : > { %1858 = vmatmul.mubr.msk.f32.gmra.mxu1 %vm250_vm1, %v2133_v25  ;;  %1874 = vmatprep.mubr.msk.f32.mxu0 %vm250_vm1, %v2142_v28  ;;  %v1620_v47 = vld [vmem:[%s2029_s23 + $0x190] sm:$0xff]  ;;  %v1628_v48 = vld [vmem:[%s2029_s23 + $0x220] sm:$0xff] }
  0x23   : > { %1860 = vmatprep.mubr.msk.f32.mxu1 %vm250_vm1, %v2139_v27  ;;  %v1629_v49 = vld [vmem:[%s2029_s23 + $0x121] sm:$0xff]  ;;  %v1630_v50 = vld [vmem:[%s2029_s23 + $0x131] sm:$0xff] }
  0x24   : > { %v1631_v51 = vld [vmem:[%s2029_s23 + $0x141] sm:$0xff]  ;;  %v1632_v52 = vld [vmem:[%s2029_s23 + $0x151] sm:$0xff] }
  0x25   : > { %1875 = vmatmul.mubr.msk.f32.gmra.mxu0 %vm250_vm1, %v2156_v30  ;;  %v1633_v53 = vld [vmem:[%s2029_s23 + $0x161] sm:$0xff]  ;;  %v1634_v54 = vld [vmem:[%s2029_s23 + $0x171] sm:$0xff] }
  0x26   : > { %1861 = vmatmul.mubr.msk.f32.gmra.mxu1 %vm250_vm1, %v2153_v29  ;;  %1893 = vmatprep.mubr.msk.f32.mxu0 %vm250_vm1, %v1621_v32  ;;  %v1635_v55 = vld [vmem:[%s2029_s23 + $0x181] sm:$0xff]  ;;  %v1636_v56 = vld [vmem:[%s2029_s23 + $0x191] sm:$0xff]  ;;  %v1670_v32 = vld [vmem:[%s2316_s2] ss:$0 sm:$0xff] }
  0x27   : > { %1879 = vmatprep.mubr.msk.f32.mxu1 %vm250_vm1, %v1613_v31  ;;  %v1644_v57 = vld [vmem:[%s2029_s23 + $0x80] sm:$0xff]  ;;  %v1652_v58 = vld [vmem:[%s2029_s23 + $0x110] sm:$0xff] }
  0x28   : > { %v1660_v59 = vld [vmem:[%s2029_s23 + $0x81] sm:$0xff] }
  0x29   : > { %1894 = vmatmul.mubr.msk.f32.vlgmr.msra.gmra.mxu0 %vm250_vm1, %v1622_v34 }
  0x2a   : > { %1880 = vmatmul.mubr.msk.f32.vlgmr.msra.gmra.mxu1 %vm250_vm1, %v1614_v33  ;;  %1920 = vmatpush3.msk.msra.mxu0 %vm275_vm0, %v1721_v20 }
  0x2b   : > { %1906 = vmatpush3.msk.msra.mxu1 %vm275_vm0, %v1711_v19  ;;  %1882 = vmatprep.mubr.msk.f32.mxu1 %vm250_vm1, %v1615_v35 }
  0x2c   : > { %1896 = vmatprep.mubr.msk.f32.mxu0 %vm250_vm1, %v1623_v36  ;;  %1933 = vmatprep.subr.msk.mxu1 %vm275_vm0, %v1731_v37 }
  0x2d   : > { %1947 = vmatprep.subr.msk.mxu0 %vm275_vm0, %v1741_v38  ;;  %1897 = vmatmul.mubr.msk.f32.gmra.mxu0 %vm250_vm1, %v1624_v40 }
  0x2e   : > { %1883 = vmatmul.mubr.msk.f32.gmra.mxu1 %vm250_vm1, %v1616_v39  ;;  %1899 = vmatprep.mubr.msk.f32.mxu0 %vm250_vm1, %v1625_v42 }
  0x2f   : > { %1885 = vmatprep.mubr.msk.f32.mxu1 %vm250_vm1, %v1617_v41 }
  0x31   : > { %1900 = vmatmul.mubr.msk.f32.gmra.mxu0 %vm250_vm1, %v1626_v44 }
  0x32   : > { %1886 = vmatmul.mubr.msk.f32.gmra.mxu1 %vm250_vm1, %v1618_v43  ;;  %1902 = vmatprep.mubr.msk.f32.mxu0 %vm250_vm1, %v1627_v46 }
  0x33   : > { %1888 = vmatprep.mubr.msk.f32.mxu1 %vm250_vm1, %v1619_v45 }
  0x35   : > { %1903 = vmatmul.mubr.msk.f32.gmra.mxu0 %vm250_vm1, %v1628_v48 }
  0x36   : > { %1889 = vmatmul.mubr.msk.f32.gmra.mxu1 %vm250_vm1, %v1620_v47  ;;  %1921 = vmatprep.mubr.msk.f32.mxu0 %vm250_vm1, %v2036_v5 }
  0x37   : > { %1907 = vmatprep.mubr.msk.f32.mxu1 %vm250_vm1, %v1629_v49 }
  0x39   : > { %1922 = vmatmul.mubr.msk.f32.vlgmr.msra.gmra.mxu0 %vm250_vm1, %v2045_v7 }
  0x3a   : > { %1908 = vmatmul.mubr.msk.f32.vlgmr.msra.gmra.mxu1 %vm250_vm1, %v1630_v50  ;;  %1948 = vmatpush3.msk.msra.mxu0 %vm275_vm0, %v1741_v38 }
  0x3b   : > { %1934 = vmatpush3.msk.msra.mxu1 %vm275_vm0, %v1731_v37  ;;  %1910 = vmatprep.mubr.msk.f32.mxu1 %vm250_vm1, %v1631_v51 }
  0x3c   : > { %1924 = vmatprep.mubr.msk.f32.mxu0 %vm250_vm1, %v2063_v11 }
  0x3d   : > { %1925 = vmatmul.mubr.msk.f32.gmra.mxu0 %vm250_vm1, %v2033_v4 }
  0x3e   : > { %1911 = vmatmul.mubr.msk.f32.gmra.mxu1 %vm250_vm1, %v1632_v52  ;;  %1927 = vmatprep.mubr.msk.f32.mxu0 %vm250_vm1, %v2042_v6 }
  0x3f   : > { %1913 = vmatprep.mubr.msk.f32.mxu1 %vm250_vm1, %v1633_v53 }
  0x41   : > { %1928 = vmatmul.mubr.msk.f32.gmra.mxu0 %vm250_vm1, %v2048_v8 }
  0x42   : > { %1914 = vmatmul.mubr.msk.f32.gmra.mxu1 %vm250_vm1, %v1634_v54  ;;  %1930 = vmatprep.mubr.msk.f32.mxu0 %vm250_vm1, %v2066_v12 }
  0x43   : > { %1916 = vmatprep.mubr.msk.f32.mxu1 %vm250_vm1, %v1635_v55 }
  0x45   : > { %1931 = vmatmul.mubr.msk.f32.gmra.mxu0 %vm250_vm1, %v1644_v57 }
  0x46   : > { %1917 = vmatmul.mubr.msk.f32.gmra.mxu1 %vm250_vm1, %v1636_v56  ;;  %1949 = vmatprep.mubr.msk.f32.mxu0 %vm250_vm1, %v2086_v16 }
  0x47   : > { %1935 = vmatprep.mubr.msk.f32.mxu1 %vm250_vm1, %v2083_v15 }
  0x49   : > { %1950 = vmatmul.mubr.msk.f32.vlgmr.msra.gmra.mxu0 %vm250_vm1, %v2092_v18 }
  0x4a   : > { %1936 = vmatmul.mubr.msk.f32.vlgmr.msra.gmra.mxu1 %vm250_vm1, %v2089_v17  ;;  %1952 = vmatprep.mubr.msk.f32.mxu0 %vm250_vm1, %v2110_v22 }
  0x4b   : > { %1938 = vmatprep.mubr.msk.f32.mxu1 %vm250_vm1, %v2107_v21 }
  0x4d   : > { %1953 = vmatmul.mubr.msk.f32.gmra.mxu0 %vm250_vm1, %v2120_v24 }
  0x4e   : > { %1939 = vmatmul.mubr.msk.f32.gmra.mxu1 %vm250_vm1, %v2117_v23  ;;  %1955 = vmatprep.mubr.msk.f32.mxu0 %vm250_vm1, %v2136_v26 }
  0x4f   : > { %1941 = vmatprep.mubr.msk.f32.mxu1 %vm250_vm1, %v2133_v25 }
  0x51   : > { %1956 = vmatmul.mubr.msk.f32.gmra.mxu0 %vm250_vm1, %v2142_v28 }
  0x52   : > { %1942 = vmatmul.mubr.msk.f32.gmra.mxu1 %vm250_vm1, %v2139_v27  ;;  %1958 = vmatprep.mubr.msk.f32.mxu0 %vm250_vm1, %v2156_v30 }
  0x53   : > { %1944 = vmatprep.mubr.msk.f32.mxu1 %vm250_vm1, %v2153_v29 }
  0x55   : > { %1959 = vmatmul.mubr.msk.f32.gmra.mxu0 %vm250_vm1, %v1660_v59 }
  0x56   : > { %1945 = vmatmul.mubr.msk.f32.gmra.mxu1 %vm250_vm1, %v1652_v58 }
  0xd1   : > { %v1839_v60 = vpop.f32.mrf.mxu0 }
  0xd2   : > { %v1845_v61 = vpop.f32.mrf.mxu1  ;;  %v391_v35 = vadd.f32 %v1839_v60, %v1670_v32 }
  0xd3   : > { %v345_v62 = vpop.f32.mrf.mxu0  ;;  %v395_v51 = vadd.f32 %v1845_v61, %v1670_v32 }
  0xd4   : > { %v365_v63 = vpop.f32.mrf.mxu1  ;;  %v390_v38 = vadd.f32 %v1670_v32, %v345_v62 }
  0xd5   : > { %v1842_v0 = vpop.f32.mrf.mxu0  ;;  %v394_v55 = vadd.f32 %v1670_v32, %v365_v63 }
  0xd6   : > { %v1848_v1 = vpop.f32.mrf.mxu1  ;;  %v393_v42 = vadd.f32 %v1842_v0, %v1670_v32 }
  0xd7   : > { %v355_v2 = vpop.f32.mrf.mxu0  ;;  %v397_v62 = vadd.f32 %v1848_v1, %v1670_v32 }
  0xd8   : > { %v2270_v3 = vpop.f32.mrf.mxu1  ;;  %v392_v46 = vadd.f32 %v1670_v32, %v355_v2 }
  0xd9   : > { %v1867_v5 = vpop.f32.mrf.mxu0 }
  0xda   : > { %v1853_v4 = vpop.f32.mrf.mxu1 }
  0xdb   : > { %v635_v7 = vpop.f32.mrf.mxu0  ;;  %v533_v39 = vadd.f32 %v1853_v4, %v391_v35 }
  0xdc   : > { %v493_v6 = vpop.f32.mrf.mxu1 }
  0xdd   : > { %v1870_v9 = vpop.f32.mrf.mxu0  ;;  %v532_v43 = vadd.f32 %v493_v6, %v390_v38  ;;  %v675_v47 = vadd.f32 %v1867_v5, %v533_v39 }
  0xde   : > { %v1856_v8 = vpop.f32.mrf.mxu1 }
  0xdf   : > { %v645_v11 = vpop.f32.mrf.mxu0  ;;  %v535_v48 = vadd.f32 %v1856_v8, %v393_v42  ;;  %v674_v52 = vadd.f32 %v635_v7, %v532_v43  ;;  %v396_v8 = vadd.f32 %v1670_v32, %v2270_v3 }
  0xe0   : > { %v503_v10 = vpop.f32.mrf.mxu1 }
  0xe1   : > { %v1873_v13 = vpop.f32.mrf.mxu0  ;;  %v534_v53 = vadd.f32 %v503_v10, %v392_v46  ;;  %v677_v58 = vadd.f32 %v1870_v9, %v535_v48 }
  0xe2   : > { %v1859_v12 = vpop.f32.mrf.mxu1 }
  0xe3   : > { %v655_v15 = vpop.f32.mrf.mxu0  ;;  %v537_v59 = vadd.f32 %v1859_v12, %v395_v51  ;;  %v676_v35 = vadd.f32 %v645_v11, %v534_v53 }
  0xe4   : > { %v513_v14 = vpop.f32.mrf.mxu1 }
  0xe5   : > { %v2272_v17 = vpop.f32.mrf.mxu0  ;;  %v536_v0 = vadd.f32 %v513_v14, %v394_v55  ;;  %v679_v10 = vadd.f32 %v1873_v13, %v537_v59 }
  0xe6   : > { %v1862_v16 = vpop.f32.mrf.mxu1 }
  0xe7   : > { %v2274_v19 = vpop.f32.mrf.mxu0  ;;  %v539_v38 = vadd.f32 %v1862_v16, %v397_v62  ;;  %v678_v9 = vadd.f32 %v655_v15, %v536_v0 }
  0xe8   : > { %v523_v18 = vpop.f32.mrf.mxu1 }
  0xe9   : > { %v1895_v21 = vpop.f32.mrf.mxu0  ;;  %v538_v12 = vadd.f32 %v523_v18, %v396_v8  ;;  %v681_v11 = vadd.f32 %v2272_v17, %v539_v38 }
  0xea   : > { %v1881_v20 = vpop.f32.mrf.mxu1 }
  0xeb   : > { %v919_v23 = vpop.f32.mrf.mxu0  ;;  %v817_v54 = vadd.f32 %v1881_v20, %v675_v47  ;;  %v680_v13 = vadd.f32 %v2274_v19, %v538_v12 }
  0xec   : > { %v777_v22 = vpop.f32.mrf.mxu1 }
  0xed   : > { %v1898_v25 = vpop.f32.mrf.mxu0  ;;  %v816_v60 = vadd.f32 %v777_v22, %v674_v52  ;;  %v959_v2 = vadd.f32 %v1895_v21, %v817_v54 }
  0xee   : > { %v1884_v24 = vpop.f32.mrf.mxu1 }
  0xef   : > { %v929_v27 = vpop.f32.mrf.mxu0  ;;  %v819_v5 = vadd.f32 %v1884_v24, %v677_v58  ;;  %v958_v20 = vadd.f32 %v919_v23, %v816_v60 }
  0xf0   : > { %v787_v26 = vpop.f32.mrf.mxu1 }
  0xf1   : > { %v2276_v29 = vpop.f32.mrf.mxu0  ;;  %v818_v63 = vadd.f32 %v787_v26, %v676_v35  ;;  %v961_v14 = vadd.f32 %v1898_v25, %v819_v5 }
  0xf2   : > { %v1887_v28 = vpop.f32.mrf.mxu1 }
  0xf3   : > { %v2278_v31 = vpop.f32.mrf.mxu0  ;;  %v821_v42 = vadd.f32 %v1887_v28, %v679_v10  ;;  %v960_v16 = vadd.f32 %v929_v27, %v818_v63 }
  0xf4   : > { %v797_v30 = vpop.f32.mrf.mxu1 }
  0xf5   : > { %v2283_v34 = vpop.f32.mrf.mxu0  ;;  %v820_v21 = vadd.f32 %v797_v30, %v678_v9  ;;  %v963_v18 = vadd.f32 %v2276_v29, %v821_v42 }
  0xf6   : > { %v1890_v33 = vpop.f32.mrf.mxu1 }
  0xf7   : > { %v2287_v37 = vpop.f32.mrf.mxu0  ;;  %v823_v23 = vadd.f32 %v1890_v33, %v681_v11 }
  0xf8   : > { %v2285_v36 = vpop.f32.mrf.mxu1 }
  0xf9   : > { %v1923_v41 = vpop.f32.mrf.mxu0  ;;  %v822_v17 = vadd.f32 %v2285_v36, %v680_v13 }
  0xfa   : > { %v1909_v40 = vpop.f32.mrf.mxu1 }
  0xfb   : > { %v1203_v45 = vpop.f32.mrf.mxu0  ;;  %v1101_v39 = vadd.f32 %v1909_v40, %v959_v2  ;;  %v964_v52 = vadd.f32 %v2287_v37, %v822_v17 }
  0xfc   : > { %v1061_v44 = vpop.f32.mrf.mxu1 }
  0xfd   : > { %v1926_v50 = vpop.f32.mrf.mxu0  ;;  %v1100_v43 = vadd.f32 %v1061_v44, %v958_v20  ;;  %v1243_v32 = vadd.f32 %v1923_v41, %v1101_v39  ;;  %v962_v44 = vadd.f32 %v2278_v31, %v820_v21 }
  0xfe   : > { %v1912_v49 = vpop.f32.mrf.mxu1 }
  0xff   : > { %v1213_v57 = vpop.f32.mrf.mxu0  ;;  %v1103_v46 = vadd.f32 %v1912_v49, %v961_v14  ;;  %v1242_v40 = vadd.f32 %v1203_v45, %v1100_v43  ;;  %v965_v45 = vadd.f32 %v2283_v34, %v823_v23 }
 0x100   : > { %v1071_v56 = vpop.f32.mrf.mxu1 }
 0x101   : > { %v1929_v6 = vpop.f32.mrf.mxu0  ;;  %v1102_v25 = vadd.f32 %v1071_v56, %v960_v16  ;;  %v1245_v30 = vadd.f32 %v1926_v50, %v1103_v46 }
 0x102   : > { %v1915_v4 = vpop.f32.mrf.mxu1 }
 0x103   : > { %v1223_v7 = vpop.f32.mrf.mxu0  ;;  %v1105_v33 = vadd.f32 %v1915_v4, %v963_v18  ;;  %v1244_v31 = vadd.f32 %v1213_v57, %v1102_v25 }
 0x104   : > { %v1081_v61 = vpop.f32.mrf.mxu1 }
 0x105   : > { %v1932_v1 = vpop.f32.mrf.mxu0  ;;  %v1104_v49 = vadd.f32 %v1081_v61, %v962_v44  ;;  %v1247_v50 = vadd.f32 %v1929_v6, %v1105_v33 }
 0x106   : > { %v1918_v22 = vpop.f32.mrf.mxu1 }
 0x107   : > { %v1233_v3 = vpop.f32.mrf.mxu0  ;;  %v1107_v55 = vadd.f32 %v1918_v22, %v965_v45  ;;  %v1246_v60 = vadd.f32 %v1223_v7, %v1104_v49 }
 0x108   : > { %v1091_v24 = vpop.f32.mrf.mxu1 }
 0x109   : > { %v1951_v15 = vpop.f32.mrf.mxu0  ;;  %v1106_v57 = vadd.f32 %v1091_v24, %v964_v52  ;;  %v1249_v37 = vadd.f32 %v1932_v1, %v1107_v55 }
 0x10a   : > { %v1937_v26 = vpop.f32.mrf.mxu1 }
 0x10b   : > { %v1385_v28 = vadd.f32 %v1937_v26, %v1243_v32  ;;  %v1487_v19 = vpop.f32.mrf.mxu0  ;;  %v1248_v38 = vadd.f32 %v1233_v3, %v1106_v57 }
 0x10c   : > { %v1345_v27 = vpop.f32.mrf.mxu1 }
 0x10d   : > { %v1527_v41 = vadd.f32 %v1951_v15, %v1385_v28  ;;  %v1384_v29 = vadd.f32 %v1345_v27, %v1242_v40  ;;  %v1954_v48 = vpop.f32.mrf.mxu0 }
 0x10e   : > { %v1940_v47 = vpop.f32.mrf.mxu1 }
 0x10f   : > { %1535 = vst [vmem:[%s2299_s16 + $0x8] sm:$0xff] %v1527_v41  ;;  %v1526_v36 = vadd.f32 %v1487_v19, %v1384_v29  ;;  %v1387_v51 = vadd.f32 %v1940_v47, %v1245_v30  ;;  %v1497_v54 = vpop.f32.mrf.mxu0 }
 0x110   : > { %v1355_v53 = vpop.f32.mrf.mxu1 }
 0x111   : > { %1534 = vst [vmem:[%s2299_s16] sm:$0xff] %v1526_v36  ;;  %v1529_v56 = vadd.f32 %v1954_v48, %v1387_v51  ;;  %v1386_v58 = vadd.f32 %v1355_v53, %v1244_v31  ;;  %v1957_v34 = vpop.f32.mrf.mxu0 }
 0x112   : > { %v1943_v59 = vpop.f32.mrf.mxu1 }
 0x113   : > { %1537 = vst [vmem:[%s2299_s16 + $0x18] sm:$0xff] %v1529_v56  ;;  %v1528_v62 = vadd.f32 %v1497_v54, %v1386_v58  ;;  %v1389_v0 = vadd.f32 %v1943_v59, %v1247_v50  ;;  %v1507_v35 = vpop.f32.mrf.mxu0 }
 0x114   : > { %v1365_v4 = vpop.f32.mrf.mxu1 }
 0x115   : > { %1536 = vst [vmem:[%s2299_s16 + $0x10] sm:$0xff] %v1528_v62  ;;  %v1531_v6 = vadd.f32 %v1957_v34, %v1389_v0  ;;  %v1388_v2 = vadd.f32 %v1365_v4, %v1246_v60  ;;  %v1960_v8 = vpop.f32.mrf.mxu0 }
 0x116   : > { %v1946_v5 = vpop.f32.mrf.mxu1 }
 0x117   : > { %1539 = vst [vmem:[%s2299_s16 + $0x28] sm:$0xff] %v1531_v6  ;;  %v1530_v61 = vadd.f32 %v1507_v35, %v1388_v2  ;;  %v1391_v10 = vadd.f32 %v1946_v5, %v1249_v37  ;;  %v1517_v39 = vpop.f32.mrf.mxu0 }
 0x118   : > { %v1375_v7 = vpop.f32.mrf.mxu1 }
 0x119   : > { %1538 = vst [vmem:[%s2299_s16 + $0x20] sm:$0xff] %v1530_v61  ;;  %v1533_v20 = vadd.f32 %v1960_v8, %v1391_v10  ;;  %v1390_v63 = vadd.f32 %v1375_v7, %v1248_v38 }
 0x11b   : > { %1541 = vst [vmem:[%s2299_s16 + $0x38] sm:$0xff] %v1533_v20  ;;  %v1532_v9 = vadd.f32 %v1517_v39, %v1390_v63 }
 0x11d   : > { %1540 = vst [vmem:[%s2299_s16 + $0x30] sm:$0xff] %v1532_v9 }
 0x11e PF: > { %s13_s12 = sadd.s32 1, %s1978_s12  }
 0x11f   : > { %p10_p4 = scmp.ge.s32.totalorder %s13_s12, 4  }
 0x121   :  { %12 = sbr.rel (!%p10_p4) target bundleno = 1 (0x1), region = 75 }

</bundles_post_ra>
